<compile_context>
chip_gen: v5e
topology: v5e:2x2
jax: 0.10.0
libtpu: 0.0.40
codegen_flags: <defaults>
</compile_context>

<pallas_src>
import functools

import jax
import jax.numpy as jnp
import numpy as np
from jax.experimental import pallas as pl
from jax.experimental.pallas import tpu as pltpu


def _upsample_kernel(p_ref, wt_ref, mask_ref, o_ref, *, n_batch, inv_count, eps):
    """Single grid step, whole batch.

    p_ref   : (N, K2C, L)   bf16 im2col patches; rows ordered (kh, kw, ci), flat
                            spatial columns with row stride Wp.
    wt_ref  : (Cout, K2C)   bf16 spatially-flipped ConvTranspose2d weight.
    mask_ref: (1, L)        f32; 1.0 on valid flat columns (col % Wp < W_out).
    o_ref   : (N, Cout, L)  conv + InstanceNorm + ReLU output (garbage columns are
                            sliced away in the wrapper).
    """
    wt = wt_ref[...]            # (Cout, K2C) bf16
    m = mask_ref[...]           # (1, L)      f32

    for n in range(n_batch):    # tiny static unroll (N=2); batch folded into one step
        # One fused MXU matmul per sample: (Cout, K2C) x (K2C, L) -> (Cout, L) f32.
        acc = jnp.dot(wt, p_ref[n], preferred_element_type=jnp.float32)

        # InstanceNorm2d(affine=False, eps): per-channel stats over the valid spatial
        # positions only (single fused sum / sum-of-squares pass, then one sweep).
        accv = acc * m
        s = jnp.sum(accv, axis=1, keepdims=True)                  # (Cout, 1)
        ss = jnp.sum(accv * accv, axis=1, keepdims=True)          # (Cout, 1)
        mean = s * inv_count
        var = jnp.maximum(ss * inv_count - mean * mean, 0.0)      # clamp before rsqrt
        y = (acc - mean) * jax.lax.rsqrt(var + eps)
        y = jnp.maximum(y, 0.0)                                   # ReLU
        # TODO(synk): nn.Dropout(0.5) is stochastic in training mode; eval-mode
        # identity here (would need pltpu.prng_seed + prng_random_bits + 2x scale).
        o_ref[n] = y.astype(o_ref.dtype)


def upsample_forward(x_nchw, weight, bias=None, *, stride=2, padding=1,
                     output_padding=1, eps=1e-5):
    """x_nchw: (N, Cin, H, W); weight: PyTorch ConvTranspose2d layout (Cin, Cout, KH, KW);
    bias: (Cout,) or None (ignored: cancelled exactly by InstanceNorm(affine=False)).
    Returns (N, Cout, H_out, W_out) with H_out = (H-1)*s - 2p + K + op."""
    del bias  # per-channel constant before InstanceNorm2d(affine=False) is a no-op
    n, c_in, h, w = x_nchw.shape
    _, c_out, kh, kw = weight.shape

    pad_lo_h = kh - 1 - padding
    pad_hi_h = pad_lo_h + output_padding
    pad_lo_w = kw - 1 - padding
    pad_hi_w = pad_lo_w + output_padding
    hd = (h - 1) * stride + 1
    wd = (w - 1) * stride + 1
    hp = hd + pad_lo_h + pad_hi_h
    wp = wd + pad_lo_w + pad_hi_w
    h_out = hp - kh + 1
    w_out = wp - kw + 1
    l_flat = h_out * wp                    # flat conv output length (row stride = Wp)
    k2c = kh * kw * c_in

    # --- XLA wrapper glue (few hundred KB): dilate-by-stride + zero-pad in NCHW,
    # flatten spatial, im2col to (N, KH*KW*Cin, L), all in bf16 for the MXU. ---
    x_b = x_nchw.astype(jnp.bfloat16)
    xp = jnp.zeros((n, c_in, hp, wp), jnp.bfloat16).at[
        :, :, pad_lo_h:pad_lo_h + hd:stride, pad_lo_w:pad_lo_w + wd:stride].set(x_b)
    xf = jnp.pad(xp.reshape(n, c_in, hp * wp), ((0, 0), (0, 0), (0, kw - 1)))
    # patches[n, (kh*KW + kw)*Cin + ci, j] = xf[n, ci, j + kh*Wp + kw]
    taps = [xf[:, :, kh_i * wp + kw_i: kh_i * wp + kw_i + l_flat]
            for kh_i in range(kh) for kw_i in range(kw)]
    patches = jnp.concatenate(taps, axis=1)                       # (N, K2C, L)

    # Spatially flipped weight, (Cout, KH*KW*Cin), column order (kh, kw, ci) to match
    # the patch row order.
    wflip = weight[:, :, ::-1, ::-1]                              # (Cin,Cout,KH,KW)
    wt = jnp.transpose(wflip, (1, 2, 3, 0)).reshape(c_out, k2c).astype(jnp.bfloat16)

    # Static validity mask over flat columns (built host-side; no XLA op).
    mask = jnp.asarray(
        np.tile(np.arange(wp) < w_out, h_out).astype(np.float32).reshape(1, l_flat))

    kernel = functools.partial(
        _upsample_kernel, n_batch=n, inv_count=1.0 / float(h_out * w_out), eps=eps)

    out_itemsize = int(jnp.dtype(x_nchw.dtype).itemsize)
    cost = pl.CostEstimate(
        flops=2 * n * c_out * k2c * l_flat,
        transcendentals=n * c_out,                                 # per-channel rsqrt
        bytes_accessed=(n * k2c * l_flat * 2 + c_out * k2c * 2 + l_flat * 4
                        + n * c_out * l_flat * out_itemsize))

    # Single grid step; per-step VMEM footprint is well under 1 MB, so no L-axis grid
    # split / vmem_limit_bytes needed at this size (revisit when scaling C / H_out up).
    out_flat = pl.pallas_call(
        kernel,
        out_shape=jax.ShapeDtypeStruct((n, c_out, l_flat), x_nchw.dtype),
        grid=(1,),
        in_specs=[
            pl.BlockSpec((n, k2c, l_flat), lambda i: (0, 0, 0)),
            pl.BlockSpec((c_out, k2c), lambda i: (0, 0)),
            pl.BlockSpec((1, l_flat), lambda i: (0, 0)),
        ],
        out_specs=pl.BlockSpec((n, c_out, l_flat), lambda i: (0, 0, 0)),
        compiler_params=pltpu.CompilerParams(dimension_semantics=("arbitrary",)),
        cost_estimate=cost,
    )(patches, wt, mask)

    # (N, Cout, H_out*Wp) -> (N, Cout, H_out, Wp) is a free reshape; drop garbage cols.
    return out_flat.reshape(n, c_out, h_out, wp)[:, :, :, :w_out]


def upsample_reference(x_nchw, weight, bias, *, stride=2, padding=1, output_padding=1,
                       eps=1e-5):
    """Pure-JAX fp32 reference (XLA conv, includes the bias) for correctness checking."""
    _, _, kh, kw = weight.shape
    x = jnp.transpose(x_nchw, (0, 2, 3, 1))
    w_k = jnp.transpose(weight[:, :, ::-1, ::-1], (2, 3, 0, 1))   # (KH,KW,Cin,Cout)
    pad_lo_h = kh - 1 - padding
    pad_hi_h = pad_lo_h + output_padding
    pad_lo_w = kw - 1 - padding
    pad_hi_w = pad_lo_w + output_padding
    y = jax.lax.conv_general_dilated(
        x, w_k, window_strides=(1, 1),
        padding=((pad_lo_h, pad_hi_h), (pad_lo_w, pad_hi_w)),
        lhs_dilation=(stride, stride),
        dimension_numbers=('NHWC', 'HWIO', 'NHWC'))
    y = y + bias
    mean = jnp.mean(y, axis=(1, 2), keepdims=True)
    var = jnp.mean(jnp.square(y - mean), axis=(1, 2), keepdims=True)
    y = jnp.maximum((y - mean) * jax.lax.rsqrt(var + eps), 0.0)
    return jnp.transpose(y, (0, 3, 1, 2))


if __name__ == "__main__":
    key = jax.random.PRNGKey(0)
    k_x, k_w, k_b = jax.random.split(key, 3)

    N, C_IN, C_OUT, H, W, K = 2, 4, 8, 16, 16, 4

    x = jax.random.normal(k_x, (N, C_IN, H, W), jnp.float32)
    # Deterministic synthetic params (PyTorch ConvTranspose2d weight layout: Cin,Cout,KH,KW)
    bound = 1.0 / float(np.sqrt(C_IN * K * K))
    weight = jax.random.uniform(k_w, (C_IN, C_OUT, K, K), jnp.float32, -bound, bound)
    bias = jax.random.uniform(k_b, (C_OUT,), jnp.float32, -bound, bound)

    out = upsample_forward(x, weight, bias)
    out = jax.block_until_ready(out)

    expected_shape = (N, C_OUT, (H - 1) * 2 - 2 + K + 1, (W - 1) * 2 - 2 + K + 1)
    assert out.shape == expected_shape, (out.shape, expected_shape)

    ref = jax.block_until_ready(upsample_reference(x, weight, bias))
    # Tolerance loosened vs. fp32 (2e-2) because the MXU matmul inputs are bf16
    # (fp32 accumulation + fp32 norm math); typical deviation is a few 1e-3.
    np.testing.assert_allclose(np.asarray(out), np.asarray(ref), rtol=2e-2, atol=2e-2)

    print("KERNEL_OK")
</pallas_src>

<mosaic_0001>
module attributes {stable_mosaic.version = 11 : i64} {
  func.func @_upsample_kernel(%arg0: i32, %arg1: memref<2x64x1188xbf16, #tpu.memory_space<vmem>>, %arg2: memref<8x64xbf16, #tpu.memory_space<vmem>>, %arg3: memref<1x1188xf32, #tpu.memory_space<vmem>>, %arg4: memref<2x8x1188xf32, #tpu.memory_space<vmem>>) attributes {dimension_semantics = [#tpu.dimension_semantics<arbitrary>], iteration_bounds = array<i64: 1>, scalar_prefetch = 0 : i64, scratch_operands = 0 : i64, tpu.core_type = #tpu.core_type<tc>, window_params = [{pipeline_mode = #tpu.pipeline_mode<synchronous>, transform_indices = @transform_0, window_bounds = array<i64: 2, 64, 1188>}, {pipeline_mode = #tpu.pipeline_mode<synchronous>, transform_indices = @transform_1, window_bounds = array<i64: 8, 64>}, {pipeline_mode = #tpu.pipeline_mode<synchronous>, transform_indices = @transform_2, window_bounds = array<i64: 1, 1188>}, {pipeline_mode = #tpu.pipeline_mode<synchronous>, transform_indices = @transform_3, window_bounds = array<i64: 2, 8, 1188>}]} {
    %c0 = arith.constant 0 : index
    %c0_0 = arith.constant 0 : index
    %0 = vector.load %arg2[%c0, %c0_0] : memref<8x64xbf16, #tpu.memory_space<vmem>>, vector<8x64xbf16>
    %c0_1 = arith.constant 0 : index
    %c0_2 = arith.constant 0 : index
    %1 = vector.load %arg3[%c0_1, %c0_2] : memref<1x1188xf32, #tpu.memory_space<vmem>>, vector<1x1188xf32>
    %c0_3 = arith.constant 0 : index
    %c0_4 = arith.constant 0 : index
    %c0_5 = arith.constant 0 : index
    %2 = vector.load %arg1[%c0_3, %c0_4, %c0_5] : memref<2x64x1188xbf16, #tpu.memory_space<vmem>>, vector<1x64x1188xbf16>
    %3 = vector.shape_cast %2 : vector<1x64x1188xbf16> to vector<64x1188xbf16>
    %cst = arith.constant dense<0.000000e+00> : vector<8x1188xf32>
    %4 = tpu.matmul %0, %3, %cst {dimension_numbers = #tpu.dot_dimension_numbers<[1], [0], [0], [1], [0, 0, 1, 1], [], []>} : vector<8x64xbf16>, vector<64x1188xbf16>, vector<8x1188xf32> -> vector<8x1188xf32>
    %5 = vector.broadcast %1 : vector<1x1188xf32> to vector<8x1188xf32>
    %6 = arith.mulf %4, %5 : vector<8x1188xf32>
    %cst_6 = arith.constant dense<0.000000e+00> : vector<8xf32>
    %7 = vector.multi_reduction <add>, %6, %cst_6 [1] : vector<8x1188xf32> to vector<8xf32>
    %8 = vector.shape_cast %7 : vector<8xf32> to vector<8x1xf32>
    %9 = arith.mulf %6, %6 : vector<8x1188xf32>
    %cst_7 = arith.constant dense<0.000000e+00> : vector<8xf32>
    %10 = vector.multi_reduction <add>, %9, %cst_7 [1] : vector<8x1188xf32> to vector<8xf32>
    %11 = vector.shape_cast %10 : vector<8xf32> to vector<8x1xf32>
    %cst_8 = arith.constant 9.18273639E-4 : f32
    %12 = vector.broadcast %cst_8 : f32 to vector<8x1xf32>
    %13 = arith.mulf %8, %12 : vector<8x1xf32>
    %cst_9 = arith.constant 9.18273639E-4 : f32
    %14 = vector.broadcast %cst_9 : f32 to vector<8x1xf32>
    %15 = arith.mulf %11, %14 : vector<8x1xf32>
    %16 = arith.mulf %13, %13 : vector<8x1xf32>
    %17 = arith.subf %15, %16 : vector<8x1xf32>
    %cst_10 = arith.constant 0.000000e+00 : f32
    %18 = vector.broadcast %cst_10 : f32 to vector<8x1xf32>
    %19 = arith.maximumf %17, %18 : vector<8x1xf32>
    %20 = vector.broadcast %13 : vector<8x1xf32> to vector<8x1188xf32>
    %21 = arith.subf %4, %20 : vector<8x1188xf32>
    %cst_11 = arith.constant 9.99999974E-6 : f32
    %22 = vector.broadcast %cst_11 : f32 to vector<8x1xf32>
    %23 = arith.addf %19, %22 : vector<8x1xf32>
    %24 = math.rsqrt %23 : vector<8x1xf32>
    %25 = vector.broadcast %24 : vector<8x1xf32> to vector<8x1188xf32>
    %26 = arith.mulf %21, %25 : vector<8x1188xf32>
    %cst_12 = arith.constant 0.000000e+00 : f32
    %27 = vector.broadcast %cst_12 : f32 to vector<8x1188xf32>
    %28 = arith.maximumf %26, %27 : vector<8x1188xf32>
    %c0_13 = arith.constant 0 : index
    %c0_14 = arith.constant 0 : index
    %c0_15 = arith.constant 0 : index
    %29 = vector.load %arg4[%c0_13, %c0_14, %c0_15] : memref<2x8x1188xf32, #tpu.memory_space<vmem>>, vector<1x8x1188xf32>
    %30 = vector.shape_cast %29 : vector<1x8x1188xf32> to vector<8x1188xf32>
    %31 = vector.shape_cast %28 : vector<8x1188xf32> to vector<1x8x1188xf32>
    tpu.vector_store %arg4[%c0_13, %c0_14, %c0_15], %31 {strides = array<i32>} : memref<2x8x1188xf32, #tpu.memory_space<vmem>>, vector<1x8x1188xf32>,
    %c1 = arith.constant 1 : index
    %c0_16 = arith.constant 0 : index
    %c0_17 = arith.constant 0 : index
    %32 = vector.load %arg1[%c1, %c0_16, %c0_17] : memref<2x64x1188xbf16, #tpu.memory_space<vmem>>, vector<1x64x1188xbf16>
    %33 = vector.shape_cast %32 : vector<1x64x1188xbf16> to vector<64x1188xbf16>
    %cst_18 = arith.constant dense<0.000000e+00> : vector<8x1188xf32>
    %34 = tpu.matmul %0, %33, %cst_18 {dimension_numbers = #tpu.dot_dimension_numbers<[1], [0], [0], [1], [0, 0, 1, 1], [], []>} : vector<8x64xbf16>, vector<64x1188xbf16>, vector<8x1188xf32> -> vector<8x1188xf32>
    %35 = vector.broadcast %1 : vector<1x1188xf32> to vector<8x1188xf32>
    %36 = arith.mulf %34, %35 : vector<8x1188xf32>
    %cst_19 = arith.constant dense<0.000000e+00> : vector<8xf32>
    %37 = vector.multi_reduction <add>, %36, %cst_19 [1] : vector<8x1188xf32> to vector<8xf32>
    %38 = vector.shape_cast %37 : vector<8xf32> to vector<8x1xf32>
    %39 = arith.mulf %36, %36 : vector<8x1188xf32>
    %cst_20 = arith.constant dense<0.000000e+00> : vector<8xf32>
    %40 = vector.multi_reduction <add>, %39, %cst_20 [1] : vector<8x1188xf32> to vector<8xf32>
    %41 = vector.shape_cast %40 : vector<8xf32> to vector<8x1xf32>
    %cst_21 = arith.constant 9.18273639E-4 : f32
    %42 = vector.broadcast %cst_21 : f32 to vector<8x1xf32>
    %43 = arith.mulf %38, %42 : vector<8x1xf32>
    %cst_22 = arith.constant 9.18273639E-4 : f32
    %44 = vector.broadcast %cst_22 : f32 to vector<8x1xf32>
    %45 = arith.mulf %41, %44 : vector<8x1xf32>
    %46 = arith.mulf %43, %43 : vector<8x1xf32>
    %47 = arith.subf %45, %46 : vector<8x1xf32>
    %cst_23 = arith.constant 0.000000e+00 : f32
    %48 = vector.broadcast %cst_23 : f32 to vector<8x1xf32>
    %49 = arith.maximumf %47, %48 : vector<8x1xf32>
    %50 = vector.broadcast %43 : vector<8x1xf32> to vector<8x1188xf32>
    %51 = arith.subf %34, %50 : vector<8x1188xf32>
    %cst_24 = arith.constant 9.99999974E-6 : f32
    %52 = vector.broadcast %cst_24 : f32 to vector<8x1xf32>
    %53 = arith.addf %49, %52 : vector<8x1xf32>
    %54 = math.rsqrt %53 : vector<8x1xf32>
    %55 = vector.broadcast %54 : vector<8x1xf32> to vector<8x1188xf32>
    %56 = arith.mulf %51, %55 : vector<8x1188xf32>
    %cst_25 = arith.constant 0.000000e+00 : f32
    %57 = vector.broadcast %cst_25 : f32 to vector<8x1188xf32>
    %58 = arith.maximumf %56, %57 : vector<8x1188xf32>
    %c1_26 = arith.constant 1 : index
    %c0_27 = arith.constant 0 : index
    %c0_28 = arith.constant 0 : index
    %59 = vector.load %arg4[%c1_26, %c0_27, %c0_28] : memref<2x8x1188xf32, #tpu.memory_space<vmem>>, vector<1x8x1188xf32>
    %60 = vector.shape_cast %59 : vector<1x8x1188xf32> to vector<8x1188xf32>
    %61 = vector.shape_cast %58 : vector<8x1188xf32> to vector<1x8x1188xf32>
    tpu.vector_store %arg4[%c1_26, %c0_27, %c0_28], %61 {strides = array<i32>} : memref<2x8x1188xf32, #tpu.memory_space<vmem>>, vector<1x8x1188xf32>,
    return
  }
  func.func @transform_0(%arg0: i32) -> (i32, i32, i32) {
    %c0_i32 = arith.constant 0 : i32
    %c0_i32_0 = arith.constant 0 : i32
    %c0_i32_1 = arith.constant 0 : i32
    %c0_i32_2 = arith.constant 0 : i32
    return %c0_i32, %c0_i32_0, %c0_i32_1 : i32, i32, i32
  }
  func.func @transform_1(%arg0: i32) -> (i32, i32) {
    %c0_i32 = arith.constant 0 : i32
    %c0_i32_0 = arith.constant 0 : i32
    %c0_i32_1 = arith.constant 0 : i32
    return %c0_i32, %c0_i32_0 : i32, i32
  }
  func.func @transform_2(%arg0: i32) -> (i32, i32) {
    %c0_i32 = arith.constant 0 : i32
    %c0_i32_0 = arith.constant 0 : i32
    %c0_i32_1 = arith.constant 0 : i32
    return %c0_i32, %c0_i32_0 : i32, i32
  }
  func.func @transform_3(%arg0: i32) -> (i32, i32, i32) {
    %c0_i32 = arith.constant 0 : i32
    %c0_i32_0 = arith.constant 0 : i32
    %c0_i32_1 = arith.constant 0 : i32
    %c0_i32_2 = arith.constant 0 : i32
    return %c0_i32, %c0_i32_0, %c0_i32_1 : i32, i32, i32
  }
}

</mosaic_0001>

<bundles_post_ra>
// kernel: tpu_custom_call.1
= control target key start
LH: loop header
LB: loop body
LE: loop exit
PB: predicated region body
PF: predicated region fallthrough
CT: control target
= control target key end

     0   :  { %8 = vsyncpa [#allocation3], 0  ;;  %s1807_s0 = inlined_call_operand.hbm [shape: bf16[2,64,1188], index: 0, kind: input, shape index: {}]   ;;  %s1808_s1 = inlined_call_operand.hbm [shape: bf16[8,64], index: 1, kind: input, shape index: {}]   ;;  %s1809_s2 = inlined_call_operand.hbm [shape: f32[1,1188], index: 2, kind: input, shape index: {}]   ;;  %s1810_s3 = inlined_call_operand.hbm [shape: f32[2,8,1188], index: 3, kind: output, shape index: {}]  }
   0x1   :  { %9 = vsyncpa [#allocation6], 0  ;;  %s29_s14 = sshll.u32 %s1808_s1, 4  ;;  %s30_s14 = int_to_ptr.hbm [resolvable:$true] %s29_s14 }
   0x2   :  { %10 = vsyncpa [#allocation4], 0  ;;  %s1585_s15 = smov [#allocation5]   ;;  %s15_s19 = sshll.u32 %s1807_s0, 4  ;;  %s16_s19 = int_to_ptr.hbm [resolvable:$true] %s15_s19 }
   0x3   :  { %s31_s16 = sshll.u32 %s1585_s15, 4  ;;  %s1586_s20 = smov [#allocation2]   ;;  %s32_s16 = int_to_ptr.vmem [resolvable:$true] %s31_s16 }
   0x4   :  { %34 = dma.hbm_to_vmem [thread:$0]  %s30_s14, 64, %s32_s16, [#allocation6]  }
   0x5   :  { %s17_s21 = sshll.u32 %s1586_s20, 4  ;;  %s1587_s22 = smov 640   ;;  %s18_s21 = int_to_ptr.vmem [resolvable:$true] %s17_s21 }
   0x6   :  { %s1588_s23 = smov 40   ;;  %s40_s1 = sshll.u32 %s1809_s2, 4  ;;  %s41_s1 = int_to_ptr.hbm [resolvable:$true] %s40_s1 }
   0x7   :  { %23 = dma.hbm_to_vmem [thread:$0]  %s16_s19, 10240, %s18_s21, [#allocation3], %s1587_s22, %s1587_s22, %s1588_s23  }
   0x8   :  { %s1589_s26 = smov [#allocation7]  }
   0x9   :  { %s42_s27 = sshll.u32 %s1589_s26, 4  ;;  %s43_s27 = int_to_ptr.vmem [resolvable:$true] %s42_s27 }
   0xa   :  { %45 = dma.hbm_to_vmem [thread:$0]  %s41_s1, 160, %s43_s27, [#allocation6]  }
   0xb   :  { %1579 = dma.done.wait [#allocation3], 10240  }
   0xc   :  { %1580 = vsyncadd [#allocation3], 4294957056 }
   0xd   :  { %1581 = dma.done.wait [#allocation6], 224  }
   0xe   :  { %1582 = vsyncadd [#allocation6], 4294967072  ;;  %v1173_v0 = vld [vmem:[#allocation2 + $0xf0] sm:$0xf]  ;;  %v1426_v1 = vld [vmem:[#allocation2 + $0x114] sm:$0xf0] }
   0xf   :  { %v1421_v2 = vld [vmem:[#allocation2 + $0xf4] sm:$0xf]  ;;  %v1174_v3 = vor.u32 %v1426_v1, %v1173_v0  ;;  %v1175_v4 = vld [vmem:[#allocation2 + $0x118] sm:$0xf0]  ;;  %v1181_v5 = vld [vmem:[#allocation2 + $0xf8] sm:$0xf] }
  0x10   :  { %v1427_v6 = vld [vmem:[#allocation2 + $0x11c] sm:$0xf0]  ;;  %v1178_v7 = vor.u32 %v1421_v2, %v1175_v4  ;;  %v1422_v9 = vld [vmem:[#allocation2 + $0xfc] sm:$0xf]  ;;  %v1183_v10 = vld [vmem:[#allocation2 + $0x120] sm:$0xf0] }
  0x11   :  { %v1182_v8 = vor.u32 %v1427_v6, %v1181_v5  ;;  %v1133_v11 = vld [vmem:[#allocation2 + $0xa0] sm:$0xf]  ;;  %310 = vmatpush.bf16.msra.mxu0 %v1174_v3  ;;  %v1186_v12 = vor.u32 %v1422_v9, %v1183_v10  ;;  %v1416_v13 = vld [vmem:[#allocation2 + $0xc4] sm:$0xf0]  ;;  %v1411_v14 = vld [vmem:[#allocation2 + $0xa4] sm:$0xf] }
  0x12   :  { %v1135_v15 = vld [vmem:[#allocation2 + $0xc8] sm:$0xf0]  ;;  %323 = vmatpush.bf16.msra.mxu1 %v1178_v7  ;;  %v1134_v16 = vor.u32 %v1416_v13, %v1133_v11  ;;  %v1141_v18 = vld [vmem:[#allocation2 + $0xa8] sm:$0xf]  ;;  %v1417_v19 = vld [vmem:[#allocation2 + $0xcc] sm:$0xf0] }
  0x13   :  { %336 = vmatpush.bf16.msra.mxu2 %v1182_v8  ;;  %v1138_v17 = vor.u32 %v1411_v14, %v1135_v15  ;;  %v1412_v20 = vld [vmem:[#allocation2 + $0xac] sm:$0xf]  ;;  %349 = vmatpush.bf16.msra.mxu3 %v1186_v12  ;;  %v1142_v21 = vor.u32 %v1417_v19, %v1141_v18  ;;  %v1143_v22 = vld [vmem:[#allocation2 + $0xd0] sm:$0xf0]  ;;  %v1093_v23 = vld [vmem:[#allocation2 + $0x50] sm:$0xf] }
  0x14   :  { %v1406_v24 = vld [vmem:[#allocation2 + $0x74] sm:$0xf0]  ;;  %v1146_v25 = vor.u32 %v1412_v20, %v1143_v22  ;;  %v1401_v26 = vld [vmem:[#allocation2 + $0x54] sm:$0xf]  ;;  %v1095_v27 = vld [vmem:[#allocation2 + $0x78] sm:$0xf0] }
  0x15   :  { %v1101_v28 = vld [vmem:[#allocation2 + $0x58] sm:$0xf]  ;;  %311 = vmatpush.bf16.msra.mxu0 %v1134_v16  ;;  %v1094_v29 = vor.u32 %v1406_v24, %v1093_v23  ;;  %v1407_v30 = vld [vmem:[#allocation2 + $0x7c] sm:$0xf0]  ;;  %v1402_v31 = vld [vmem:[#allocation2 + $0x5c] sm:$0xf]  ;;  %v1098_v33 = vor.u32 %v1401_v26, %v1095_v27 }
  0x16   :  { %v1103_v32 = vld [vmem:[#allocation2 + $0x80] sm:$0xf0]  ;;  %324 = vmatpush.bf16.msra.mxu1 %v1138_v17  ;;  %v1102_v34 = vor.u32 %v1407_v30, %v1101_v28  ;;  %v1053_v35 = vld [vmem:[#allocation2] sm:$0xf]  ;;  %v1396_v36 = vld [vmem:[#allocation2 + $0x24] sm:$0xf0] }
  0x17   :  { %337 = vmatpush.bf16.msra.mxu2 %v1142_v21  ;;  %v1391_v37 = vld [vmem:[#allocation2 + $0x4] sm:$0xf]  ;;  %350 = vmatpush.bf16.msra.mxu3 %v1146_v25  ;;  %v1106_v38 = vor.u32 %v1402_v31, %v1103_v32  ;;  %v1055_v39 = vld [vmem:[#allocation2 + $0x28] sm:$0xf0]  ;;  %v1061_v40 = vld [vmem:[#allocation2 + $0x8] sm:$0xf]  ;;  %v1054_v44 = vor.u32 %v1396_v36, %v1053_v35 }
  0x18   :  { %v1397_v41 = vld [vmem:[#allocation2 + $0x2c] sm:$0xf0]  ;;  %v1392_v42 = vld [vmem:[#allocation2 + $0xc] sm:$0xf]  ;;  %v1063_v43 = vld [vmem:[#allocation2 + $0x30] sm:$0xf0]  ;;  %v1058_v47 = vor.u32 %v1391_v37, %v1055_v39 }
  0x19   :  { %312 = vmatpush.bf16.msra.mxu0 %v1094_v29  ;;  %v1197_v45 = vld [vmem:[#allocation2 + $0x108] sm:$0xf]  ;;  %v1429_v46 = vld [vmem:[#allocation2 + $0x12c] sm:$0xf0]  ;;  %v1062_v48 = vor.u32 %v1397_v41, %v1061_v40  ;;  %vm302_vm0 = vcmask 523264   ;;  %v1066_v51 = vor.u32 %v1392_v42, %v1063_v43  ;;  %vm476_vm1 = vcmask 293888  }
  0x1a   :  { %325 = vmatpush.bf16.msra.mxu1 %v1098_v33  ;;  %v1423_v49 = vld [vmem:[#allocation2 + $0x104] sm:$0xf]  ;;  %v1191_v50 = vld [vmem:[#allocation2 + $0x128] sm:$0xf0]  ;;  %v1198_v52 = vor.u32 %v1429_v46, %v1197_v45  ;;  %v1189_v53 = vld [vmem:[#allocation2 + $0x100] sm:$0xf] }
  0x1b   :  { %338 = vmatpush.bf16.msra.mxu2 %v1102_v34  ;;  %351 = vmatpush.bf16.msra.mxu3 %v1106_v38  ;;  %v1428_v54 = vld [vmem:[#allocation2 + $0x124] sm:$0xf0]  ;;  %v1424_v55 = vld [vmem:[#allocation2 + $0x10c] sm:$0xf]  ;;  %v1194_v56 = vor.u32 %v1423_v49, %v1191_v50  ;;  %v1199_v57 = vld [vmem:[#allocation2 + $0x130] sm:$0xf0] }
  0x1c   :  { %v1157_v58 = vld [vmem:[#allocation2 + $0xb8] sm:$0xf]  ;;  %v1419_v59 = vld [vmem:[#allocation2 + $0xdc] sm:$0xf0]  ;;  %v1413_v61 = vld [vmem:[#allocation2 + $0xb4] sm:$0xf]  ;;  %v1190_v63 = vor.u32 %v1428_v54, %v1189_v53  ;;  %v1202_v0 = vor.u32 %v1424_v55, %v1199_v57 }
  0x1d   :  { %313 = vmatpush.bf16.msra.mxu0 %v1054_v44  ;;  %v1622_v60 = vld [vmem:[#allocation5] sm:$0xf]  ;;  %v1151_v62 = vld [vmem:[#allocation2 + $0xd8] sm:$0xf0]  ;;  %v1158_v1 = vor.u32 %v1419_v59, %v1157_v58  ;;  %v1149_v2 = vld [vmem:[#allocation2 + $0xb0] sm:$0xf] }
  0x1e   :  { %326 = vmatpush.bf16.msra.mxu1 %v1058_v47  ;;  %v1418_v3 = vld [vmem:[#allocation2 + $0xd4] sm:$0xf0]  ;;  %v1414_v4 = vld [vmem:[#allocation2 + $0xbc] sm:$0xf]  ;;  %v1154_v5 = vor.u32 %v1413_v61, %v1151_v62  ;;  %v1159_v6 = vld [vmem:[#allocation2 + $0xe0] sm:$0xf0] }
  0x1f   :  { %339 = vmatpush.bf16.msra.mxu2 %v1062_v48  ;;  %352 = vmatpush.bf16.msra.mxu3 %v1066_v51  ;;  %v1117_v7 = vld [vmem:[#allocation2 + $0x68] sm:$0xf]  ;;  %v1409_v8 = vld [vmem:[#allocation2 + $0x8c] sm:$0xf0]  ;;  %v1403_v9 = vld [vmem:[#allocation2 + $0x64] sm:$0xf]  ;;  %v1150_v11 = vor.u32 %v1418_v3, %v1149_v2  ;;  %v1162_v13 = vor.u32 %v1414_v4, %v1159_v6 }
  0x20   :  { %1211 = vmatmul.msk.bf16.vlgmr.msra.gmra.mxu0 %vm302_vm0, %v1622_v60  ;;  %v1111_v10 = vld [vmem:[#allocation2 + $0x88] sm:$0xf0]  ;;  %v1109_v12 = vld [vmem:[#allocation2 + $0x60] sm:$0xf]  ;;  %v1118_v14 = vor.u32 %v1409_v8, %v1117_v7  ;;  %v1408_v15 = vld [vmem:[#allocation2 + $0x84] sm:$0xf0] }
  0x21   :  { %1212 = vmatmul.msk.bf16.vlgmr.msra.gmra.mxu1 %vm302_vm0, %v1622_v60  ;;  %362 = vmatpush.bf16.msrb.mxu0 %v1190_v63  ;;  %v1404_v16 = vld [vmem:[#allocation2 + $0x6c] sm:$0xf]  ;;  %v1119_v17 = vld [vmem:[#allocation2 + $0x90] sm:$0xf0]  ;;  %v1114_v18 = vor.u32 %v1403_v9, %v1111_v10  ;;  %v1077_v19 = vld [vmem:[#allocation2 + $0x18] sm:$0xf]  ;;  %v1110_v25 = vor.u32 %v1408_v15, %v1109_v12 }
  0x22   :  { %375 = vmatpush.bf16.msrb.mxu1 %v1194_v56  ;;  %1213 = vmatmul.msk.bf16.vlgmr.msra.gmra.mxu2 %vm302_vm0, %v1622_v60  ;;  %v1399_v20 = vld [vmem:[#allocation2 + $0x3c] sm:$0xf0]  ;;  %v1393_v21 = vld [vmem:[#allocation2 + $0x14] sm:$0xf]  ;;  %v1071_v22 = vld [vmem:[#allocation2 + $0x38] sm:$0xf0]  ;;  %v1122_v29 = vor.u32 %v1404_v16, %v1119_v17 }
  0x23   :  { %388 = vmatpush.bf16.msrb.mxu2 %v1198_v52  ;;  %1214 = vmatmul.msk.bf16.vlgmr.msra.gmra.mxu3 %vm302_vm0, %v1622_v60  ;;  %v1343_v23 = vld [vmem:[#allocation2 + $0x230] sm:$0xf]  ;;  %v1466_v24 = vld [vmem:[#allocation2 + $0x254] sm:$0xf0]  ;;  %v1425_v27 = vld [vmem:[#allocation2 + $0x114] sm:$0xf]  ;;  %v1078_v30 = vor.u32 %v1399_v20, %v1077_v19  ;;  %v1074_v34 = vor.u32 %v1393_v21, %v1071_v22 }
  0x24   :  { %401 = vmatpush.bf16.msrb.mxu3 %v1202_v0  ;;  %v1069_v26 = vld [vmem:[#allocation2 + $0x10] sm:$0xf]  ;;  %v1207_v28 = vld [vmem:[#allocation2 + $0x138] sm:$0xf0]  ;;  %v1398_v31 = vld [vmem:[#allocation2 + $0x34] sm:$0xf0]  ;;  %v1344_v35 = vor.u32 %v1466_v24, %v1343_v23 }
  0x25   :  { %363 = vmatpush.bf16.msrb.mxu0 %v1150_v11  ;;  %v1394_v32 = vld [vmem:[#allocation2 + $0x1c] sm:$0xf]  ;;  %v1079_v33 = vld [vmem:[#allocation2 + $0x40] sm:$0xf0]  ;;  %v1205_v36 = vld [vmem:[#allocation2 + $0x110] sm:$0xf]  ;;  %v1210_v39 = vor.u32 %v1425_v27, %v1207_v28  ;;  %v1070_v43 = vor.u32 %v1398_v31, %v1069_v26 }
  0x26   :  { %376 = vmatpush.bf16.msrb.mxu1 %v1154_v5  ;;  %v1430_v37 = vld [vmem:[#allocation2 + $0x134] sm:$0xf0]  ;;  %v1461_v38 = vld [vmem:[#allocation2 + $0x234] sm:$0xf]  ;;  %v1345_v40 = vld [vmem:[#allocation2 + $0x258] sm:$0xf0]  ;;  %v1082_v44 = vor.u32 %v1394_v32, %v1079_v33 }
  0x27   :  { %389 = vmatpush.bf16.msrb.mxu2 %v1158_v1  ;;  %v1303_v41 = vld [vmem:[#allocation2 + $0x1e0] sm:$0xf]  ;;  %v1456_v42 = vld [vmem:[#allocation2 + $0x204] sm:$0xf0]  ;;  %v1206_v45 = vor.u32 %v1430_v37, %v1205_v36  ;;  %v1348_v48 = vor.u32 %v1461_v38, %v1345_v40  ;;  %v1415_v50 = vld [vmem:[#allocation2 + $0xc4] sm:$0xf] }
  0x28   :  { %402 = vmatpush.bf16.msrb.mxu3 %v1162_v13  ;;  %v1165_v46 = vld [vmem:[#allocation2 + $0xc0] sm:$0xf]  ;;  %v1420_v47 = vld [vmem:[#allocation2 + $0xe4] sm:$0xf0]  ;;  %v1304_v49 = vor.u32 %v1456_v42, %v1303_v41  ;;  %v1167_v51 = vld [vmem:[#allocation2 + $0xe8] sm:$0xf0] }
  0x29   :  { %364 = vmatpush.bf16.msrb.mxu0 %v1110_v25  ;;  %v1451_v52 = vld [vmem:[#allocation2 + $0x1e4] sm:$0xf]  ;;  %v1305_v53 = vld [vmem:[#allocation2 + $0x208] sm:$0xf0]  ;;  %v1263_v54 = vld [vmem:[#allocation2 + $0x190] sm:$0xf]  ;;  %v1166_v56 = vor.u32 %v1420_v47, %v1165_v46  ;;  %v1170_v57 = vor.u32 %v1415_v50, %v1167_v51 }
  0x2a   :  { %377 = vmatpush.bf16.msrb.mxu1 %v1114_v18  ;;  %v1446_v55 = vld [vmem:[#allocation2 + $0x1b4] sm:$0xf0]  ;;  %v1125_v58 = vld [vmem:[#allocation2 + $0x70] sm:$0xf]  ;;  %v1308_v61 = vor.u32 %v1451_v52, %v1305_v53  ;;  %v1405_v63 = vld [vmem:[#allocation2 + $0x74] sm:$0xf] }
  0x2b   :  { %390 = vmatpush.bf16.msrb.mxu2 %v1118_v14  ;;  %v1410_v59 = vld [vmem:[#allocation2 + $0x94] sm:$0xf0]  ;;  %v1264_v62 = vor.u32 %v1446_v55, %v1263_v54  ;;  %v1127_v0 = vld [vmem:[#allocation2 + $0x98] sm:$0xf0]  ;;  %v1441_v1 = vld [vmem:[#allocation2 + $0x194] sm:$0xf] }
  0x2c   :  { %403 = vmatpush.bf16.msrb.mxu3 %v1122_v29  ;;  %v1265_v2 = vld [vmem:[#allocation2 + $0x1b8] sm:$0xf0]  ;;  %v1223_v3 = vld [vmem:[#allocation2 + $0x140] sm:$0xf]  ;;  %v1436_v4 = vld [vmem:[#allocation2 + $0x164] sm:$0xf0]  ;;  %v1126_v7 = vor.u32 %v1410_v59, %v1125_v58  ;;  %v1130_v8 = vor.u32 %v1405_v63, %v1127_v0 }
  0x2d   :  { %365 = vmatpush.bf16.msrb.mxu0 %v1070_v43  ;;  %v1359_v5 = vld [vmem:[#allocation2 + $0x240] sm:$0xf]  ;;  %v1468_v6 = vld [vmem:[#allocation2 + $0x264] sm:$0xf0]  ;;  %v1395_v11 = vld [vmem:[#allocation2 + $0x24] sm:$0xf]  ;;  %v1268_v12 = vor.u32 %v1441_v1, %v1265_v2  ;;  %v1224_v13 = vor.u32 %v1436_v4, %v1223_v3 }
  0x2e   :  { %378 = vmatpush.bf16.msrb.mxu1 %v1074_v34  ;;  %v1085_v9 = vld [vmem:[#allocation2 + $0x20] sm:$0xf]  ;;  %v1400_v10 = vld [vmem:[#allocation2 + $0x44] sm:$0xf0]  ;;  %v1087_v14 = vld [vmem:[#allocation2 + $0x48] sm:$0xf0]  ;;  %v1360_v17 = vor.u32 %v1468_v6, %v1359_v5 }
  0x2f   :  { %391 = vmatpush.bf16.msrb.mxu2 %v1078_v30  ;;  %v1431_v15 = vld [vmem:[#allocation2 + $0x144] sm:$0xf]  ;;  %v1225_v16 = vld [vmem:[#allocation2 + $0x168] sm:$0xf0]  ;;  %v1351_v18 = vld [vmem:[#allocation2 + $0x238] sm:$0xf]  ;;  %v1086_v24 = vor.u32 %v1400_v10, %v1085_v9  ;;  %v1090_v25 = vor.u32 %v1395_v11, %v1087_v14 }
  0x30   :  { %404 = vmatpush.bf16.msrb.mxu3 %v1082_v44  ;;  %1215 = vmatmul.msk.bf16.vlgmr.msrb.gmra.mxu0 %vm302_vm0, %v1622_v60  ;;  %v1467_v19 = vld [vmem:[#allocation2 + $0x25c] sm:$0xf0]  ;;  %v1462_v20 = vld [vmem:[#allocation2 + $0x23c] sm:$0xf]  ;;  %v1353_v21 = vld [vmem:[#allocation2 + $0x260] sm:$0xf0]  ;;  %v1228_v28 = vor.u32 %v1431_v15, %v1225_v16 }
  0x31   :  { %414 = vmatpush.bf16.msra.mxu0 %v1206_v45  ;;  %1216 = vmatmul.msk.bf16.vlgmr.msrb.gmra.mxu1 %vm302_vm0, %v1622_v60  ;;  %v1463_v22 = vld [vmem:[#allocation2 + $0x244] sm:$0xf]  ;;  %v1361_v23 = vld [vmem:[#allocation2 + $0x268] sm:$0xf0]  ;;  %v1319_v26 = vld [vmem:[#allocation2 + $0x1f0] sm:$0xf]  ;;  %v1352_v29 = vor.u32 %v1467_v19, %v1351_v18  ;;  %v1356_v30 = vor.u32 %v1462_v20, %v1353_v21 }
  0x32   :  { %427 = vmatpush.bf16.msra.mxu1 %v1210_v39  ;;  %1217 = vmatmul.msk.bf16.vlgmr.msrb.gmra.mxu2 %vm302_vm0, %v1622_v60  ;;  %v1458_v27 = vld [vmem:[#allocation2 + $0x214] sm:$0xf0]  ;;  %v1364_v31 = vor.u32 %v1463_v22, %v1361_v23  ;;  %v1311_v32 = vld [vmem:[#allocation2 + $0x1e8] sm:$0xf]  ;;  %v1457_v33 = vld [vmem:[#allocation2 + $0x20c] sm:$0xf0] }
  0x33   :  { %804 = vmatpush.bf16.msra.mxu2 %v1344_v35  ;;  %1218 = vmatmul.msk.bf16.vlgmr.msrb.gmra.mxu3 %vm302_vm0, %v1622_v60  ;;  %v1320_v34 = vor.u32 %v1458_v27, %v1319_v26  ;;  %v1452_v35 = vld [vmem:[#allocation2 + $0x1ec] sm:$0xf]  ;;  %v1313_v36 = vld [vmem:[#allocation2 + $0x210] sm:$0xf0]  ;;  %v1312_v37 = vor.u32 %v1457_v33, %v1311_v32  ;;  %v1321_v39 = vld [vmem:[#allocation2 + $0x218] sm:$0xf0] }
  0x34   :  { %817 = vmatpush.bf16.msra.mxu3 %v1348_v48  ;;  %v1453_v38 = vld [vmem:[#allocation2 + $0x1f4] sm:$0xf]  ;;  %v1279_v40 = vld [vmem:[#allocation2 + $0x1a0] sm:$0xf]  ;;  %v1448_v41 = vld [vmem:[#allocation2 + $0x1c4] sm:$0xf0]  ;;  %v1316_v44 = vor.u32 %v1452_v35, %v1313_v36 }
  0x35   :  { %415 = vmatpush.bf16.msra.mxu0 %v1166_v56  ;;  %v1271_v42 = vld [vmem:[#allocation2 + $0x198] sm:$0xf]  ;;  %v1447_v43 = vld [vmem:[#allocation2 + $0x1bc] sm:$0xf0]  ;;  %v1324_v45 = vor.u32 %v1453_v38, %v1321_v39  ;;  %v1442_v46 = vld [vmem:[#allocation2 + $0x19c] sm:$0xf] }
  0x36   :  { %428 = vmatpush.bf16.msra.mxu1 %v1170_v57  ;;  %v1273_v47 = vld [vmem:[#allocation2 + $0x1c0] sm:$0xf0]  ;;  %v1272_v50 = vor.u32 %v1447_v43, %v1271_v42  ;;  %v1281_v51 = vld [vmem:[#allocation2 + $0x1c8] sm:$0xf0]  ;;  %v1239_v52 = vld [vmem:[#allocation2 + $0x150] sm:$0xf] }
  0x37   :  { %805 = vmatpush.bf16.msra.mxu2 %v1304_v49  ;;  %v1443_v48 = vld [vmem:[#allocation2 + $0x1a4] sm:$0xf]  ;;  %v1280_v49 = vor.u32 %v1448_v41, %v1279_v40  ;;  %v1438_v53 = vld [vmem:[#allocation2 + $0x174] sm:$0xf0]  ;;  %v1231_v54 = vld [vmem:[#allocation2 + $0x148] sm:$0xf] }
  0x38   :  { %818 = vmatpush.bf16.msra.mxu3 %v1308_v61  ;;  %v1437_v55 = vld [vmem:[#allocation2 + $0x16c] sm:$0xf0]  ;;  %v1470_v57 = vld [vmem:[#allocation2 + $0x274] sm:$0xf0]  ;;  %v1367_v58 = vld [vmem:[#allocation2 + $0x248] sm:$0xf]  ;;  %v1276_v61 = vor.u32 %v1442_v46, %v1273_v47  ;;  %v1240_v2 = vor.u32 %v1438_v53, %v1239_v52 }
  0x39   :  { %416 = vmatpush.bf16.msra.mxu0 %v1126_v7  ;;  %v1375_v56 = vld [vmem:[#allocation2 + $0x250] sm:$0xf]  ;;  %v1432_v63 = vld [vmem:[#allocation2 + $0x14c] sm:$0xf]  ;;  %v1233_v0 = vld [vmem:[#allocation2 + $0x170] sm:$0xf0]  ;;  %v1232_v3 = vor.u32 %v1437_v55, %v1231_v54 }
  0x3a   :  { %429 = vmatpush.bf16.msra.mxu1 %v1130_v8  ;;  %v1469_v59 = vld [vmem:[#allocation2 + $0x26c] sm:$0xf0]  ;;  %v1433_v1 = vld [vmem:[#allocation2 + $0x154] sm:$0xf]  ;;  %v1241_v4 = vld [vmem:[#allocation2 + $0x178] sm:$0xf0]  ;;  %v1376_v7 = vor.u32 %v1470_v57, %v1375_v56  ;;  %v1236_v15 = vor.u32 %v1432_v63, %v1233_v0 }
  0x3b   :  { %806 = vmatpush.bf16.msra.mxu2 %v1264_v62  ;;  %v1284_v62 = vor.u32 %v1443_v48, %v1281_v51  ;;  %v1464_v5 = vld [vmem:[#allocation2 + $0x24c] sm:$0xf]  ;;  %v1369_v6 = vld [vmem:[#allocation2 + $0x270] sm:$0xf0]  ;;  %v1368_v8 = vor.u32 %v1469_v59, %v1367_v58  ;;  %v1377_v10 = vld [vmem:[#allocation2 + $0x278] sm:$0xf0]  ;;  %v1244_v16 = vor.u32 %v1433_v1, %v1241_v4 }
  0x3c   :  { %819 = vmatpush.bf16.msra.mxu3 %v1268_v12  ;;  %v1465_v9 = vld [vmem:[#allocation2 + $0x254] sm:$0xf]  ;;  %v1335_v11 = vld [vmem:[#allocation2 + $0x200] sm:$0xf]  ;;  %v1460_v12 = vld [vmem:[#allocation2 + $0x224] sm:$0xf0] }
  0x3d   :  { %417 = vmatpush.bf16.msra.mxu0 %v1086_v24  ;;  %v1459_v14 = vld [vmem:[#allocation2 + $0x21c] sm:$0xf0]  ;;  %v1380_v18 = vor.u32 %v1465_v9, %v1377_v10  ;;  %v1454_v19 = vld [vmem:[#allocation2 + $0x1fc] sm:$0xf]  ;;  %v1336_v20 = vor.u32 %v1460_v12, %v1335_v11  ;;  %v1329_v22 = vld [vmem:[#allocation2 + $0x220] sm:$0xf0] }
  0x3e   :  { %430 = vmatpush.bf16.msra.mxu1 %v1090_v25  ;;  %v1455_v23 = vld [vmem:[#allocation2 + $0x204] sm:$0xf]  ;;  %v1337_v24 = vld [vmem:[#allocation2 + $0x228] sm:$0xf0]  ;;  %v1295_v25 = vld [vmem:[#allocation2 + $0x1b0] sm:$0xf]  ;;  %v1332_v27 = vor.u32 %v1454_v19, %v1329_v22 }
  0x3f   :  { %807 = vmatpush.bf16.msra.mxu2 %v1224_v13  ;;  %v1327_v13 = vld [vmem:[#allocation2 + $0x1f8] sm:$0xf]  ;;  %v1289_v32 = vld [vmem:[#allocation2 + $0x1d0] sm:$0xf0]  ;;  %v1440_v38 = vld [vmem:[#allocation2 + $0x184] sm:$0xf0] }
  0x40   :  { %820 = vmatpush.bf16.msra.mxu3 %v1228_v28  ;;  %1219 = vmatmul.msk.bf16.vlgmr.msra.gmra.mxu0 %vm302_vm0, %v1622_v60  ;;  %v1328_v21 = vor.u32 %v1459_v14, %v1327_v13  ;;  %v1450_v26 = vld [vmem:[#allocation2 + $0x1d4] sm:$0xf0]  ;;  %v1340_v28 = vor.u32 %v1455_v23, %v1337_v24  ;;  %v1445_v33 = vld [vmem:[#allocation2 + $0x1b4] sm:$0xf]  ;;  %v1439_v42 = vld [vmem:[#allocation2 + $0x17c] sm:$0xf0] }
  0x41   :  { %830 = vmatpush.bf16.msrb.mxu0 %v1352_v29  ;;  %1220 = vmatmul.msk.bf16.vlgmr.msra.gmra.mxu1 %vm302_vm0, %v1622_v60  ;;  %v1287_v29 = vld [vmem:[#allocation2 + $0x1a8] sm:$0xf]  ;;  %v1296_v35 = vor.u32 %v1450_v26, %v1295_v25  ;;  %v1247_v41 = vld [vmem:[#allocation2 + $0x158] sm:$0xf]  ;;  %v1434_v43 = vld [vmem:[#allocation2 + $0x15c] sm:$0xf] }
  0x42   :  { %843 = vmatpush.bf16.msrb.mxu1 %v1356_v30  ;;  %1381 = vmatmul.msk.bf16.vlgmr.msra.gmra.mxu2 %vm302_vm0, %v1622_v60  ;;  %v1449_v30 = vld [vmem:[#allocation2 + $0x1cc] sm:$0xf0]  ;;  %v1257_v46 = vld [vmem:[#allocation2 + $0x188] sm:$0xf0]  ;;  %v1248_v48 = vor.u32 %v1439_v42, %v1247_v41  ;;  %v1668_v53 = vld [vmem:[#allocation7] sm:$0xff]  ;;  %s1590_s0 = smov [#allocation8]  }
  0x43   :  { %856 = vmatpush.bf16.msrb.mxu2 %v1360_v17  ;;  %1382 = vmatmul.msk.bf16.vlgmr.msra.gmra.mxu3 %vm302_vm0, %v1622_v60  ;;  %v1372_v17 = vor.u32 %v1464_v5, %v1369_v6  ;;  %v1288_v36 = vor.u32 %v1449_v30, %v1287_v29  ;;  %v438_v54 = vperm.slane %v1668_v53, 0  ;;  %v439_v55 = vperm.slane %v1668_v53, 1  ;;  %s1035_s2 = sshll.u32 %s1590_s0, 4  ;;  %s1037_s30 = sshll.u32 %s1810_s3, 4  ;;  %s1036_s2 = int_to_ptr.vmem [resolvable:$true] %s1035_s2  ;;  %s1038_s30 = int_to_ptr.hbm [resolvable:$true] %s1037_s30 }
  0x44   :  { %869 = vmatpush.bf16.msrb.mxu3 %v1364_v31  ;;  %v1444_v31 = vld [vmem:[#allocation2 + $0x1ac] sm:$0xf]  ;;  %v440_v57 = vperm.slane %v1668_v53, 2  ;;  %v441_v0 = vperm.slane %v1668_v53, 3  ;;  %v443_v12 = vperm.slane %v1668_v53, 5  ;;  %v444_v19 = vperm.slane %v1668_v53, 6 }
  0x45   :  { %831 = vmatpush.bf16.msrb.mxu0 %v1312_v37  ;;  %v1255_v37 = vld [vmem:[#allocation2 + $0x160] sm:$0xf]  ;;  %v1292_v39 = vor.u32 %v1444_v31, %v1289_v32  ;;  %v445_v22 = vperm.slane %v1668_v53, 7  ;;  %s1591_s4 = smov 1280   ;;  %s1592_s5 = smov 80  }
  0x46   :  { %844 = vmatpush.bf16.msrb.mxu1 %v1316_v44  ;;  %v1249_v44 = vld [vmem:[#allocation2 + $0x180] sm:$0xf0]  ;;  %v1256_v47 = vor.u32 %v1440_v38, %v1255_v37 }
  0x47   :  { %857 = vmatpush.bf16.msrb.mxu2 %v1320_v34  ;;  %v1297_v34 = vld [vmem:[#allocation2 + $0x1d8] sm:$0xf0] }
  0x48   :  { %870 = vmatpush.bf16.msrb.mxu3 %v1324_v45  ;;  %v1300_v40 = vor.u32 %v1445_v33, %v1297_v34  ;;  %v1435_v45 = vld [vmem:[#allocation2 + $0x164] sm:$0xf]  ;;  %v1714_v33 = vld [vmem:[#allocation7 + $0x8] sm:$0x3] }
  0x49   :  { %832 = vmatpush.bf16.msrb.mxu0 %v1272_v50  ;;  %v1260_v50 = vor.u32 %v1435_v45, %v1257_v46  ;;  %v446_v37 = vperm.slane %v1714_v33, 0  ;;  %v447_v38 = vperm.slane %v1714_v33, 1 }
  0x4a   :  { %845 = vmatpush.bf16.msrb.mxu1 %v1276_v61 }
  0x4b   :  { %858 = vmatpush.bf16.msrb.mxu2 %v1280_v49  ;;  %v1252_v49 = vor.u32 %v1434_v43, %v1249_v44 }
  0x4c   :  { %871 = vmatpush.bf16.msrb.mxu3 %v1284_v62 }
  0x4d   :  { %833 = vmatpush.bf16.msrb.mxu0 %v1232_v3  ;;  %v442_v3 = vperm.slane %v1668_v53, 4 }
  0x4e   :  { %846 = vmatpush.bf16.msrb.mxu1 %v1236_v15 }
  0x4f   :  { %859 = vmatpush.bf16.msrb.mxu2 %v1240_v2 }
  0x50   :  { %872 = vmatpush.bf16.msrb.mxu3 %v1244_v16  ;;  %1383 = vmatmul.msk.bf16.vlgmr.msrb.gmra.mxu0 %vm302_vm0, %v1622_v60 }
  0x51   :  { %882 = vmatpush.bf16.msra.mxu0 %v1368_v8  ;;  %1384 = vmatmul.msk.bf16.vlgmr.msrb.gmra.mxu1 %vm302_vm0, %v1622_v60 }
  0x52   :  { %895 = vmatpush.bf16.msra.mxu1 %v1372_v17  ;;  %1385 = vmatmul.msk.bf16.vlgmr.msrb.gmra.mxu2 %vm302_vm0, %v1622_v60 }
  0x53   :  { %908 = vmatpush.bf16.msra.mxu2 %v1376_v7  ;;  %1386 = vmatmul.msk.bf16.vlgmr.msrb.gmra.mxu3 %vm302_vm0, %v1622_v60 }
  0x54   :  { %921 = vmatpush.bf16.msra.mxu3 %v1380_v18 }
  0x55   :  { %883 = vmatpush.bf16.msra.mxu0 %v1328_v21 }
  0x56   :  { %896 = vmatpush.bf16.msra.mxu1 %v1332_v27 }
  0x57   :  { %909 = vmatpush.bf16.msra.mxu2 %v1336_v20 }
  0x58   :  { %922 = vmatpush.bf16.msra.mxu3 %v1340_v28 }
  0x59   :  { %884 = vmatpush.bf16.msra.mxu0 %v1288_v36 }
  0x5a   :  { %897 = vmatpush.bf16.msra.mxu1 %v1292_v39 }
  0x5b   :  { %910 = vmatpush.bf16.msra.mxu2 %v1296_v35 }
  0x5c   :  { %923 = vmatpush.bf16.msra.mxu3 %v1300_v40 }
  0x5d   :  { %885 = vmatpush.bf16.msra.mxu0 %v1248_v48 }
  0x5e   :  { %898 = vmatpush.bf16.msra.mxu1 %v1252_v49 }
  0x5f   :  { %911 = vmatpush.bf16.msra.mxu2 %v1256_v47 }
  0x60   :  { %924 = vmatpush.bf16.msra.mxu3 %v1260_v50  ;;  %1387 = vmatmul.msk.bf16.vlgmr.msra.gmra.mxu0 %vm302_vm0, %v1622_v60 }
  0x61   :  { %1388 = vmatmul.msk.bf16.vlgmr.msra.gmra.mxu1 %vm302_vm0, %v1622_v60 }
  0x62   :  { %1389 = vmatmul.msk.bf16.vlgmr.msra.gmra.mxu2 %vm302_vm0, %v1622_v60 }
  0x63   :  { %1390 = vmatmul.msk.bf16.vlgmr.msra.gmra.mxu3 %vm302_vm0, %v1622_v60 }
  0x9d   :  { %v1664_v51 = vpop.f32.mrf.mxu0 }
  0x9e   :  { %v1666_v52 = vpop.f32.mrf.mxu1  ;;  %v458_v60 = vmul.f32 %v438_v54, %v1664_v51 }
  0x9f   :  { %v459_v61 = vmul.f32 %v439_v55, %v1666_v52 }
  0xa0   :  { %v481_v1 = vmul.f32 %v458_v60, %v458_v60 }
  0xa1   :  { %v482_v2 = vmul.f32 %v459_v61, %v459_v61  ;;  %v468_v7 = vadd.f32 %v459_v61, %v458_v60 }
  0xa3   :  { %v491_v9 = vadd.f32 %v482_v2, %v481_v1 }
  0xa5   :  { %v1672_v56 = vpop.f32.mrf.mxu2  ;;  %v317_v59 = vpop.f32.mrf.mxu0 }
  0xa6   :  { %v1675_v58 = vpop.f32.mrf.mxu3  ;;  %v330_v62 = vpop.f32.mrf.mxu1  ;;  %v460_v63 = vmul.f32 %v440_v57, %v1672_v56 }
  0xa7   :  { %v461_v5 = vmul.f32 %v441_v0, %v1675_v58 }
  0xa8   :  { %v483_v4 = vmul.f32 %v460_v63, %v460_v63  ;;  %v469_v13 = vadd.f32 %v468_v7, %v460_v63 }
  0xa9   :  { %v484_v16 = vmul.f32 %v461_v5, %v461_v5 }
  0xaa   :  { %v492_v15 = vadd.f32 %v491_v9, %v483_v4  ;;  %v470_v20 = vadd.f32 %v469_v13, %v461_v5 }
  0xac   :  { %v493_v21 = vadd.f32 %v492_v15, %v484_v16 }
  0xad   :  { %v343_v6 = vpop.f32.mrf.mxu2  ;;  %v1691_v10 = vpop.f32.mrf.mxu0 }
  0xae   :  { %v356_v8 = vpop.f32.mrf.mxu3  ;;  %v1693_v11 = vpop.f32.mrf.mxu1  ;;  %v462_v14 = vmul.f32 %v442_v3, %v1691_v10 }
  0xaf   :  { %v463_v18 = vmul.f32 %v443_v12, %v1693_v11 }
  0xb0   :  { %v485_v17 = vmul.f32 %v462_v14, %v462_v14  ;;  %v471_v23 = vadd.f32 %v470_v20, %v462_v14 }
  0xb1   :  { %v486_v27 = vmul.f32 %v463_v18, %v463_v18 }
  0xb2   :  { %v494_v26 = vadd.f32 %v493_v21, %v485_v17  ;;  %v472_v34 = vadd.f32 %v471_v23, %v463_v18 }
  0xb4   :  { %v495_v35 = vadd.f32 %v494_v26, %v486_v27 }
  0xb5   :  { %v1704_v24 = vpop.f32.mrf.mxu2  ;;  %v369_v29 = vpop.f32.mrf.mxu0 }
  0xb6   :  { %v1706_v25 = vpop.f32.mrf.mxu3  ;;  %v464_v28 = vmul.f32 %v444_v19, %v1704_v24  ;;  %v382_v30 = vpop.f32.mrf.mxu1 }
  0xb7   :  { %v465_v32 = vmul.f32 %v445_v22, %v1706_v25 }
  0xb8   :  { %v487_v31 = vmul.f32 %v464_v28, %v464_v28  ;;  %v473_v36 = vadd.f32 %v472_v34, %v464_v28 }
  0xb9   :  { %v488_v40 = vmul.f32 %v465_v32, %v465_v32 }
  0xba   :  { %v496_v39 = vadd.f32 %v495_v35, %v487_v31  ;;  %v474_v45 = vadd.f32 %v473_v36, %v465_v32 }
  0xbc   :  { %v497_v48 = vadd.f32 %v496_v39, %v488_v40 }
  0xbd   :  { %v395_v41 = vpop.f32.mrf.mxu2  ;;  %v1718_v43 = vpop.f32.mrf.mxu0 }
  0xbe   :  { %v408_v42 = vpop.f32.mrf.mxu3  ;;  %v1720_v44 = vpop.f32.mrf.mxu1  ;;  %v466_v46 = vmul.f32 %v446_v37, %v1718_v43 }
  0xbf   :  { %v467_v47 = vmul.f32 %v447_v38, %v1720_v44 }
  0xc0   :  { %v489_v49 = vmul.f32 %v466_v46, %v466_v46  ;;  %v475_v50 = vadd.f32 %v474_v45, %v466_v46 }
  0xc1   :  { %v477_v59 = vsel %vm476_vm1, %v467_v47, 0.0  ;;  %v490_v60 = vmul.f32 %v467_v47, %v467_v47 }
  0xc2   :  { %v478_v61 = vadd.f32 %v477_v59, %v475_v50  ;;  %v498_v62 = vadd.f32 %v497_v48, %v489_v49 }
  0xc3   :  { %v499_v63 = vsel %vm476_vm1, %v490_v60, 0.0 }
  0xc4   :  { %479 = vadd.xlane.f32.xlu0 %v478_v61  ;;  %v500_v4 = vadd.f32 %v499_v63, %v498_v62 }
  0xc5   :  { %v1730_v1 = vpop.f32.mrf.mxu2  ;;  %v421_v5 = vpop.f32.mrf.mxu0 }
  0xc6   :  { %v1732_v2 = vpop.f32.mrf.mxu3  ;;  %v434_v6 = vpop.f32.mrf.mxu1  ;;  %501 = vadd.xlane.f32.xlu1 %v500_v4  ;;  %v930_v7 = vmul.f32 %v1730_v1, %v438_v54 }
  0xc7   :  { %v931_v8 = vmul.f32 %v1732_v2, %v439_v55 }
  0xc8   :  { %v952_v17 = vmul.f32 %v930_v7, %v930_v7 }
  0xc9   :  { %v953_v18 = vmul.f32 %v931_v8, %v931_v8  ;;  %v940_v21 = vadd.f32 %v931_v8, %v930_v7 }
  0xcb   :  { %v962_v23 = vadd.f32 %v953_v18, %v952_v17 }
  0xcd   :  { %v811_v9 = vpop.f32.mrf.mxu2  ;;  %v1740_v14 = vpop.f32.mrf.mxu0 }
  0xce   :  { %v824_v13 = vpop.f32.mrf.mxu3  ;;  %v1742_v15 = vpop.f32.mrf.mxu1  ;;  %v932_v16 = vmul.f32 %v1740_v14, %v440_v57 }
  0xcf   :  { %v933_v54 = vmul.f32 %v1742_v15, %v441_v0 }
  0xd0   :  { %v954_v20 = vmul.f32 %v932_v16, %v932_v16  ;;  %v941_v27 = vadd.f32 %v940_v21, %v932_v16 }
  0xd1   :  { %v955_v31 = vmul.f32 %v933_v54, %v933_v54 }
  0xd2   :  { %v963_v30 = vadd.f32 %v962_v23, %v954_v20  ;;  %v942_v34 = vadd.f32 %v941_v27, %v933_v54 }
  0xd4   :  { %v964_v35 = vadd.f32 %v963_v30, %v955_v31 }
  0xd5   :  { %v1750_v55 = vpop.f32.mrf.mxu2  ;;  %v837_v29 = vpop.f32.mrf.mxu0 }
  0xd6   :  { %v1752_v26 = vpop.f32.mrf.mxu3  ;;  %v934_v28 = vmul.f32 %v1750_v55, %v442_v3  ;;  %v850_v57 = vpop.f32.mrf.mxu1 }
  0xd7   :  { %v935_v0 = vmul.f32 %v1752_v26, %v443_v12 }
  0xd8   :  { %v956_v32 = vmul.f32 %v934_v28, %v934_v28  ;;  %v943_v36 = vadd.f32 %v942_v34, %v934_v28 }
  0xd9   :  { %v957_v40 = vmul.f32 %v935_v0, %v935_v0 }
  0xda   :  { %v965_v39 = vadd.f32 %v964_v35, %v956_v32  ;;  %v944_v12 = vadd.f32 %v943_v36, %v935_v0 }
  0xdc   :  { %v966_v48 = vadd.f32 %v965_v39, %v957_v40 }
  0xdd   :  { %v863_v41 = vpop.f32.mrf.mxu2  ;;  %v1760_v45 = vpop.f32.mrf.mxu0 }
  0xde   :  { %v876_v42 = vpop.f32.mrf.mxu3  ;;  %v1762_v46 = vpop.f32.mrf.mxu1  ;;  %v936_v3 = vmul.f32 %v1760_v45, %v444_v19 }
  0xdf   :  { %v937_v47 = vmul.f32 %v1762_v46, %v445_v22 }
  0xe0   :  { %v958_v49 = vmul.f32 %v936_v3, %v936_v3  ;;  %v945_v50 = vadd.f32 %v944_v12, %v936_v3 }
  0xe1   :  { %v959_v60 = vmul.f32 %v937_v47, %v937_v47 }
  0xe2   :  { %v967_v59 = vadd.f32 %v966_v48, %v958_v49  ;;  %v946_v63 = vadd.f32 %v945_v50, %v937_v47 }
  0xe4   :  { %v968_v5 = vadd.f32 %v967_v59, %v959_v60 }
  0xe5   :  { %v1770_v61 = vpop.f32.mrf.mxu2  ;;  %v889_v19 = vpop.f32.mrf.mxu0 }
  0xe6   :  { %v1772_v62 = vpop.f32.mrf.mxu3  ;;  %v938_v4 = vmul.f32 %v1770_v61, %v446_v37  ;;  %v902_v22 = vpop.f32.mrf.mxu1 }
  0xe7   :  { %v939_v53 = vmul.f32 %v1772_v62, %v447_v38 }
  0xe8   :  { %v960_v6 = vmul.f32 %v938_v4, %v938_v4  ;;  %v947_v8 = vadd.f32 %v946_v63, %v938_v4 }
  0xe9   :  { %v961_v7 = vmul.f32 %v939_v53, %v939_v53  ;;  %v948_v9 = vsel %vm476_vm1, %v939_v53, 0.0 }
  0xea   :  { %v949_v13 = vadd.f32 %v948_v9, %v947_v8  ;;  %v969_v16 = vadd.f32 %v968_v5, %v960_v6 }
  0xeb   :  { %v970_v17 = vsel %vm476_vm1, %v961_v7, 0.0 }
  0xec   :  { %950 = vadd.xlane.f32.xlu0 %v949_v13  ;;  %v971_v18 = vadd.f32 %v970_v17, %v969_v16 }
  0xed   :  { %v915_v20 = vpop.f32.mrf.mxu2 }
  0xee   :  { %v928_v37 = vpop.f32.mrf.mxu3  ;;  %972 = vadd.xlane.f32.xlu1 %v971_v18 }
 0x137   :  { %v480_v33 = vpop.xlane.xlu0 %479 }
 0x138   :  { %v503_v54 = vmul.f32 0.00091827364, %v480_v33 }
 0x139   :  { %v502_v38 = vpop.xlane.xlu1 %501 }
 0x13a   :  { %v504_v21 = vmul.f32 0.00091827364, %v502_v38  ;;  %v505_v23 = vmul.f32 %v503_v54, %v503_v54  ;;  %v508_v35 = vsub.f32 %v1664_v51, %v503_v54  ;;  %v509_v36 = vsub.f32 %v1666_v52, %v503_v54 }
 0x13b   :  { %v510_v39 = vsub.f32 %v1672_v56, %v503_v54  ;;  %v511_v40 = vsub.f32 %v1675_v58, %v503_v54  ;;  %v512_v41 = vsub.f32 %v1691_v10, %v503_v54  ;;  %v513_v42 = vsub.f32 %v1693_v11, %v503_v54 }
 0x13c   :  { %v506_v27 = vsub.f32 %v504_v21, %v505_v23  ;;  %v514_v3 = vsub.f32 %v1704_v24, %v503_v54  ;;  %v515_v51 = vsub.f32 %v1706_v25, %v503_v54  ;;  %v516_v56 = vsub.f32 %v1718_v43, %v503_v54 }
 0x13d   :  { %v517_v10 = vsub.f32 %v1720_v44, %v503_v54 }
 0x13e   :  { %v507_v28 = vmax.f32 %v506_v27, 0.0 }
 0x140   :  { %v518_v29 = vadd.f32 1e-05, %v507_v28 }
 0x142   :  { %1479 = vrsqrt.f32 %v518_v29  ;;  %vm525_vm3 = vweird.f32 %v518_v29 }
 0x148   :  { %v1480_v57 = vpop.eup %1479 }
 0x149   :  { %v520_v30 = vmul.f32 %v1480_v57, %v518_v29  ;;  %vm526_vm2 = vweird.f32 %v1480_v57 }
 0x14a   :  { %vm527_vm4 = vmor %vm525_vm3, %vm526_vm2 }
 0x14b   :  { %v521_v31 = vmul.f32 %v1480_v57, %v520_v30 }
 0x14d   :  { %v522_v32 = vmul.f32 0.5, %v521_v31 }
 0x14f   :  { %v523_v0 = vsub.f32 1.5, %v522_v32 }
 0x151   :  { %v524_v34 = vmul.f32 %v1480_v57, %v523_v0 }
 0x153   :  { %v528_v47 = vsel %vm527_vm4, %v1480_v57, %v524_v34 }
 0x154   :  { %v529_v12 = vmul.f32 %v528_v47, %v508_v35  ;;  %v530_v48 = vmul.f32 %v528_v47, %v509_v36  ;;  %v531_v49 = vmul.f32 %v528_v47, %v510_v39  ;;  %v532_v50 = vmul.f32 %v528_v47, %v511_v40 }
 0x155   :  { %v533_v59 = vmul.f32 %v528_v47, %v512_v41  ;;  %v534_v52 = vmul.f32 %v528_v47, %v513_v42  ;;  %v535_v60 = vmul.f32 %v528_v47, %v514_v3  ;;  %v536_v4 = vmul.f32 %v528_v47, %v515_v51 }
 0x156   :  { %v539_v58 = vmax.f32 %v529_v12, 0.0  ;;  %v540_v63 = vmax.f32 %v530_v48, 0.0  ;;  %v541_v11 = vmax.f32 %v531_v49, 0.0  ;;  %v542_v53 = vmax.f32 %v532_v50, 0.0 }
 0x157   :  { %v537_v24 = vmul.f32 %v528_v47, %v516_v56  ;;  %v543_v19 = vmax.f32 %v533_v59, 0.0  ;;  %v538_v22 = vmul.f32 %v528_v47, %v517_v10  ;;  %v544_v5 = vmax.f32 %v534_v52, 0.0 }
 0x158   :  { %549 = vst [vmem:[#allocation8] sm:$0xff] %v539_v58  ;;  %v545_v6 = vmax.f32 %v535_v60, 0.0  ;;  %v546_v25 = vmax.f32 %v536_v4, 0.0 }
 0x159   :  { %550 = vst [vmem:[#allocation8 + $0x8] sm:$0xff] %v540_v63  ;;  %v547_v7 = vmax.f32 %v537_v24, 0.0  ;;  %v548_v43 = vmax.f32 %v538_v22, 0.0 }
 0x15a   :  { %551 = vst [vmem:[#allocation8 + $0x10] sm:$0xff] %v541_v11 }
 0x15b   :  { %552 = vst [vmem:[#allocation8 + $0x18] sm:$0xff] %v542_v53 }
 0x15c   :  { %553 = vst [vmem:[#allocation8 + $0x20] sm:$0xff] %v543_v19 }
 0x15d   :  { %554 = vst [vmem:[#allocation8 + $0x28] sm:$0xff] %v544_v5 }
 0x15e   :  { %555 = vst [vmem:[#allocation8 + $0x30] sm:$0xff] %v545_v6 }
 0x15f   :  { %v951_v8 = vpop.xlane.xlu0 %950  ;;  %556 = vst [vmem:[#allocation8 + $0x38] sm:$0xff] %v546_v25 }
 0x160   :  { %v974_v44 = vmul.f32 0.00091827364, %v951_v8  ;;  %557 = vst [vmem:[#allocation8 + $0x40] sm:$0xff] %v547_v7 }
 0x161   :  { %v973_v9 = vpop.xlane.xlu1 %972  ;;  %558 = vst.msk [vmem:[#allocation8 + $0x48] sm:$0xff] %vm476_vm1, %v548_v43 }
 0x162   :  { %v975_v13 = vmul.f32 0.00091827364, %v973_v9  ;;  %v976_v16 = vmul.f32 %v974_v44, %v974_v44  ;;  %v979_v27 = vsub.f32 %v1730_v1, %v974_v44  ;;  %v980_v28 = vsub.f32 %v1732_v2, %v974_v44 }
 0x163   :  { %v981_v29 = vsub.f32 %v1740_v14, %v974_v44  ;;  %v982_v57 = vsub.f32 %v1742_v15, %v974_v44  ;;  %v983_v30 = vsub.f32 %v1750_v55, %v974_v44  ;;  %v984_v31 = vsub.f32 %v1752_v26, %v974_v44 }
 0x164   :  { %v977_v17 = vsub.f32 %v975_v13, %v976_v16  ;;  %v985_v32 = vsub.f32 %v1760_v45, %v974_v44  ;;  %v986_v1 = vsub.f32 %v1762_v46, %v974_v44  ;;  %v987_v14 = vsub.f32 %v1770_v61, %v974_v44 }
 0x165   :  { %v988_v55 = vsub.f32 %v1772_v62, %v974_v44 }
 0x166   :  { %v978_v18 = vmax.f32 %v977_v17, 0.0 }
 0x168   :  { %v989_v20 = vadd.f32 1e-05, %v978_v18 }
 0x16a   :  { %1481 = vrsqrt.f32 %v989_v20  ;;  %vm996_vm6 = vweird.f32 %v989_v20 }
 0x170   :  { %v1482_v37 = vpop.eup %1481 }
 0x171   :  { %v991_v33 = vmul.f32 %v1482_v37, %v989_v20  ;;  %vm997_vm5 = vweird.f32 %v1482_v37 }
 0x172   :  { %vm998_vm7 = vmor %vm996_vm6, %vm997_vm5 }
 0x173   :  { %v992_v54 = vmul.f32 %v1482_v37, %v991_v33 }
 0x175   :  { %v993_v38 = vmul.f32 0.5, %v992_v54 }
 0x177   :  { %v994_v21 = vsub.f32 1.5, %v993_v38 }
 0x179   :  { %v995_v23 = vmul.f32 %v1482_v37, %v994_v21 }
 0x17b   :  { %v999_v0 = vsel %vm998_vm7, %v1482_v37, %v995_v23 }
 0x17c   :  { %v1000_v34 = vmul.f32 %v999_v0, %v979_v27  ;;  %v1001_v35 = vmul.f32 %v999_v0, %v980_v28  ;;  %v1002_v36 = vmul.f32 %v999_v0, %v981_v29  ;;  %v1003_v39 = vmul.f32 %v999_v0, %v982_v57 }
 0x17d   :  { %v1004_v40 = vmul.f32 %v999_v0, %v983_v30  ;;  %v1005_v2 = vmul.f32 %v999_v0, %v984_v31  ;;  %v1006_v41 = vmul.f32 %v999_v0, %v985_v32  ;;  %v1007_v3 = vmul.f32 %v999_v0, %v986_v1 }
 0x17e   :  { %v1010_v15 = vmax.f32 %v1000_v34, 0.0  ;;  %v1011_v42 = vmax.f32 %v1001_v35, 0.0  ;;  %v1012_v26 = vmax.f32 %v1002_v36, 0.0  ;;  %v1013_v47 = vmax.f32 %v1003_v39, 0.0 }
 0x17f   :  { %v1008_v45 = vmul.f32 %v999_v0, %v987_v14  ;;  %v1014_v12 = vmax.f32 %v1004_v40, 0.0  ;;  %v1009_v48 = vmul.f32 %v999_v0, %v988_v55  ;;  %v1015_v49 = vmax.f32 %v1005_v2, 0.0 }
 0x180   :  { %1021 = vst [vmem:[#allocation8 + $0x50] sm:$0xff] %v1010_v15  ;;  %v1016_v50 = vmax.f32 %v1006_v41, 0.0  ;;  %v1017_v46 = vmax.f32 %v1007_v3, 0.0 }
 0x181   :  { %1022 = vst [vmem:[#allocation8 + $0x58] sm:$0xff] %v1011_v42  ;;  %v1018_v61 = vmax.f32 %v1008_v45, 0.0  ;;  %v1019_v62 = vmax.f32 %v1009_v48, 0.0 }
 0x182   :  { %1023 = vst [vmem:[#allocation8 + $0x60] sm:$0xff] %v1012_v26 }
 0x183   :  { %1024 = vst [vmem:[#allocation8 + $0x68] sm:$0xff] %v1013_v47 }
 0x184   :  { %1025 = vst [vmem:[#allocation8 + $0x70] sm:$0xff] %v1014_v12 }
 0x185   :  { %1026 = vst [vmem:[#allocation8 + $0x78] sm:$0xff] %v1015_v49 }
 0x186   :  { %1027 = vst [vmem:[#allocation8 + $0x80] sm:$0xff] %v1016_v50 }
 0x187   :  { %1028 = vst [vmem:[#allocation8 + $0x88] sm:$0xff] %v1017_v46 }
 0x188   :  { %1029 = vst [vmem:[#allocation8 + $0x90] sm:$0xff] %v1018_v61 }
 0x189   :  { %1030 = vst.msk [vmem:[#allocation8 + $0x98] sm:$0xff] %vm476_vm1, %v1019_v62 }
 0x18a   :  { %1043 = dma.vmem_to_hbm [thread:$0]  %s1036_s2, 2560, %s1038_s30, [#allocation4], %s1591_s4, %s1591_s4, %s1592_s5  }
 0x18b   :  { %1583 = dma.done.wait [#allocation4], 2560  }
 0x18c   :  { %1584 = vsyncadd [#allocation4], 4294964736 }
 0x18d   :  { %1048 = vsyncpa [#allocation3], 1 }
 0x18e   :  { %1049 = vsyncpa [#allocation6], 1 }
 0x18f   :  { %1050 = vsyncpa [#allocation4], 1 }

</bundles_post_ra>
